<compile_context>
chip_gen: v6e
topology: v6e:2x2x1
jax: 0.10.0
libtpu: 0.0.40
codegen_flags: <defaults>
</compile_context>

<pallas_src>
import jax
import jax.numpy as jnp
import numpy as np
from jax.experimental import pallas as pl
from jax.experimental.pallas import tpu as pltpu

# ---- model hyper-parameters (mirroring the PyTorch module) -----------------
ENCODER_FEATURE_DIM = 32
ACTION_SHAPE = 5
LAYER_WIDTH = 64
MAX_SIGMA = 10.0
MIN_SIGMA = 0.0001
LN_EPS = 1e-5              # torch.nn.LayerNorm default eps
SOFTPLUS_THRESHOLD = 20.0  # torch.nn.functional.softplus default threshold

DIN = ENCODER_FEATURE_DIM + ACTION_SHAPE   # 37 (kept unpadded in HBM)
DOUT = ENCODER_FEATURE_DIM                 # 32
HEAD = 2 * DOUT                            # 64 = [mu | sigma] fused head width


def _round_up(a, m):
    return ((a + m - 1) // m) * m


def _transition_kernel(x_ref, w1_ref, b1_ref, g_ref, beta_ref, wh_ref, bh_ref,
                       out_ref):
    """Fused: fc -> LayerNorm -> relu -> fused (fc_mu|fc_sigma) -> softplus/rescale.

    Output slab layout (lane axis, width HEAD=64):
      cols [0, DOUT)       -> mu
      cols [DOUT, 2*DOUT)  -> sigma (already softplus'd + rescaled)
    """
    x = x_ref[...]                                            # (TB, DIN)

    # ---- fc: Linear(DIN -> H); K=37 is padded to lanes inside the MXU ----
    h = jnp.dot(x, w1_ref[...], preferred_element_type=jnp.float32)
    h = h + b1_ref[...]                                       # (TB, H), f32

    # ---- LayerNorm over last dim (biased variance, like PyTorch) ----
    mean = jnp.mean(h, axis=-1, keepdims=True)
    centered = h - mean
    var = jnp.mean(centered * centered, axis=-1, keepdims=True)
    h = centered * jax.lax.rsqrt(var + LN_EPS)
    h = h * g_ref[...] + beta_ref[...]

    # ---- ReLU ----
    h = jnp.maximum(h, 0.0)

    # ---- fused fc_mu | fc_sigma: Linear(H -> HEAD) ----
    raw = jnp.dot(h, wh_ref[...], preferred_element_type=jnp.float32)
    raw = raw + bh_ref[...]                                   # (TB, HEAD)

    # ---- softplus + affine rescale on the sigma lanes (whole-vreg math) ----
    # PyTorch softplus: x for x > threshold, else log(1 + exp(x))
    sp = jnp.where(raw > SOFTPLUS_THRESHOLD,
                   raw,
                   jnp.log1p(jnp.exp(jnp.minimum(raw, SOFTPLUS_THRESHOLD))))
    sigma_t = MIN_SIGMA + (MAX_SIGMA - MIN_SIGMA) * sp
    col = jax.lax.broadcasted_iota(jnp.int32, raw.shape, 1)
    out_ref[...] = jnp.where(col >= DOUT, sigma_t, raw)


def probabilistic_transition_forward(x, params, tb=None):
    """x: (B, encoder_feature_dim + action_shape) float32 -> (mu, sigma).

    Note: jit-compile this wrapper (or the enclosing step) so the row pad and
    the mu/sigma slices fuse.  At tiny deployed batches (O(8)) the launch
    overhead dominates ~20 KFLOP of compute; batch many transition evaluations
    per call for best end-to-end throughput.
    """
    B = x.shape[0]
    w1, b1, g, beta, wmu, bmu, wsig, bsig = params

    # ---- batch tile selection ------------------------------------------------
    if tb is None:
        tb = 4096                       # amortize per-step pipeline overhead
    tb = max(8, _round_up(int(tb), 8))
    if B > 8:
        # Guarantee >= 2 grid blocks so both v7x TensorCores engage (harmless
        # on single-TC v5e/v6e).
        tb = min(tb, _round_up((B + 1) // 2, 8))
    tb = min(tb, _round_up(B, 8))
    Bp = _round_up(B, tb)
    n_blocks = Bp // tb

    # ---- wrapper-side packing (no feature padding in HBM) --------------------
    x = x.astype(jnp.float32)
    if Bp > B:
        # Zero rows are harmless: rows are independent and the padded rows'
        # outputs are sliced off below.  Do NOT add cross-row reductions to
        # the kernel without masking these rows.
        x = jnp.pad(x, ((0, Bp - B), (0, 0)))
    b1_2d = b1.reshape(1, -1)
    g_2d = g.reshape(1, -1)
    beta_2d = beta.reshape(1, -1)
    wh = jnp.concatenate([wmu, wsig], axis=1)                 # (H, 64)
    bh_2d = jnp.concatenate([bmu, bsig], axis=0).reshape(1, -1)  # (1, 64)

    vmem = pltpu.MemorySpace.VMEM
    const0 = lambda i: (0, 0)   # weights/biases: resident, never re-fetched

    slab = pl.pallas_call(
        _transition_kernel,
        out_shape=jax.ShapeDtypeStruct((Bp, HEAD), jnp.float32),
        grid_spec=pltpu.PrefetchScalarGridSpec(
            num_scalar_prefetch=0,
            grid=(n_blocks,),
            in_specs=[
                pl.BlockSpec((tb, DIN), lambda i: (i, 0), memory_space=vmem),
                pl.BlockSpec((DIN, LAYER_WIDTH), const0, memory_space=vmem),
                pl.BlockSpec((1, LAYER_WIDTH), const0, memory_space=vmem),
                pl.BlockSpec((1, LAYER_WIDTH), const0, memory_space=vmem),
                pl.BlockSpec((1, LAYER_WIDTH), const0, memory_space=vmem),
                pl.BlockSpec((LAYER_WIDTH, HEAD), const0, memory_space=vmem),
                pl.BlockSpec((1, HEAD), const0, memory_space=vmem),
            ],
            out_specs=pl.BlockSpec((tb, HEAD), lambda i: (i, 0),
                                   memory_space=vmem),
        ),
        compiler_params=pltpu.CompilerParams(
            dimension_semantics=("parallel",),   # batch tiles independent
            vmem_limit_bytes=16 << 20,           # actual use < 4 MiB at tb=4096
        ),
    )(x, w1, b1_2d, g_2d, beta_2d, wh, bh_2d)

    mu = slab[:B, :DOUT]
    sigma = slab[:B, DOUT:2 * DOUT]
    return mu, sigma


def init_params(key):
    """Deterministic init mimicking torch.nn.Linear (uniform +-1/sqrt(fan_in))
    and torch.nn.LayerNorm (gamma=1, beta=0).  Weights stored (in, out)."""
    din, h, dout = DIN, LAYER_WIDTH, DOUT
    ks = jax.random.split(key, 6)

    def linear(kw, kb, fan_in, fan_out):
        bound = 1.0 / np.sqrt(fan_in)
        w = jax.random.uniform(kw, (fan_in, fan_out), jnp.float32, -bound, bound)
        b = jax.random.uniform(kb, (fan_out,), jnp.float32, -bound, bound)
        return w, b

    w1, b1 = linear(ks[0], ks[1], din, h)
    wmu, bmu = linear(ks[2], ks[3], h, dout)
    wsig, bsig = linear(ks[4], ks[5], h, dout)
    gamma = jnp.ones((h,), jnp.float32)
    beta = jnp.zeros((h,), jnp.float32)
    return (w1, b1, gamma, beta, wmu, bmu, wsig, bsig)


def reference_forward(x, params):
    """Pure-JAX reference of the PyTorch forward (softplus sigma, per spec)."""
    w1, b1, g, beta, wmu, bmu, wsig, bsig = params
    h = x @ w1 + b1
    mean = jnp.mean(h, axis=-1, keepdims=True)
    var = jnp.mean((h - mean) ** 2, axis=-1, keepdims=True)
    h = (h - mean) / jnp.sqrt(var + LN_EPS) * g + beta
    h = jnp.maximum(h, 0.0)
    mu = h @ wmu + bmu
    s = h @ wsig + bsig
    sp = jnp.where(s > SOFTPLUS_THRESHOLD, s,
                   jnp.log1p(jnp.exp(jnp.minimum(s, SOFTPLUS_THRESHOLD))))
    sigma = MIN_SIGMA + (MAX_SIGMA - MIN_SIGMA) * sp
    return mu, sigma


if __name__ == "__main__":
    key = jax.random.PRNGKey(0)
    k_params, k_x = jax.random.split(key)

    # B deliberately not a multiple of the batch tile to exercise row padding,
    # with tb=32 so the grid has several iterations (pipelining + both-TC path).
    B = 100
    x = jax.random.normal(k_x, (B, DIN), jnp.float32)
    params = init_params(k_params)

    fwd = jax.jit(probabilistic_transition_forward, static_argnames=("tb",))
    mu, sigma = fwd(x, params, tb=32)
    mu, sigma = jax.block_until_ready(mu), jax.block_until_ready(sigma)

    mu_ref, sigma_ref = reference_forward(x, params)
    assert np.allclose(np.asarray(mu), np.asarray(mu_ref), atol=1e-4, rtol=1e-4)
    assert np.allclose(np.asarray(sigma), np.asarray(sigma_ref), atol=1e-4, rtol=1e-4)
    assert mu.shape == (B, ENCODER_FEATURE_DIM)
    assert sigma.shape == (B, ENCODER_FEATURE_DIM)
    assert float(jnp.min(sigma)) >= MIN_SIGMA

    # Also exercise the default (large) tile path with a single-pass shape.
    mu2, sigma2 = fwd(x, params)
    jax.block_until_ready(mu2)
    assert np.allclose(np.asarray(mu2), np.asarray(mu_ref), atol=1e-4, rtol=1e-4)
    assert np.allclose(np.asarray(sigma2), np.asarray(sigma_ref), atol=1e-4, rtol=1e-4)

    print("KERNEL_OK")
</pallas_src>

<mosaic_0001>
module attributes {stable_mosaic.version = 11 : i64} {
  func.func @_transition_kernel(%arg0: i32, %arg1: memref<32x37xf32, #tpu.memory_space<vmem>>, %arg2: memref<37x64xf32, #tpu.memory_space<vmem>>, %arg3: memref<1x64xf32, #tpu.memory_space<vmem>>, %arg4: memref<1x64xf32, #tpu.memory_space<vmem>>, %arg5: memref<1x64xf32, #tpu.memory_space<vmem>>, %arg6: memref<64x64xf32, #tpu.memory_space<vmem>>, %arg7: memref<1x64xf32, #tpu.memory_space<vmem>>, %arg8: memref<32x64xf32, #tpu.memory_space<vmem>>) attributes {dimension_semantics = [#tpu.dimension_semantics<parallel>], iteration_bounds = array<i64: 4>, scalar_prefetch = 0 : i64, scratch_operands = 0 : i64, tpu.core_type = #tpu.core_type<tc>, window_params = [{transform_indices = @transform_0, window_bounds = array<i64: 32, 37>}, {pipeline_mode = #tpu.pipeline_mode<synchronous>, transform_indices = @transform_1, window_bounds = array<i64: 37, 64>}, {pipeline_mode = #tpu.pipeline_mode<synchronous>, transform_indices = @transform_2, window_bounds = array<i64: 1, 64>}, {pipeline_mode = #tpu.pipeline_mode<synchronous>, transform_indices = @transform_3, window_bounds = array<i64: 1, 64>}, {pipeline_mode = #tpu.pipeline_mode<synchronous>, transform_indices = @transform_4, window_bounds = array<i64: 1, 64>}, {pipeline_mode = #tpu.pipeline_mode<synchronous>, transform_indices = @transform_5, window_bounds = array<i64: 64, 64>}, {pipeline_mode = #tpu.pipeline_mode<synchronous>, transform_indices = @transform_6, window_bounds = array<i64: 1, 64>}, {transform_indices = @transform_7, window_bounds = array<i64: 32, 64>}]} {
    %c0 = arith.constant 0 : index
    %c0_0 = arith.constant 0 : index
    %0 = vector.load %arg1[%c0, %c0_0] : memref<32x37xf32, #tpu.memory_space<vmem>>, vector<32x37xf32>
    %c0_1 = arith.constant 0 : index
    %c0_2 = arith.constant 0 : index
    %1 = vector.load %arg2[%c0_1, %c0_2] : memref<37x64xf32, #tpu.memory_space<vmem>>, vector<37x64xf32>
    %cst = arith.constant dense<0.000000e+00> : vector<32x64xf32>
    %2 = tpu.matmul %0, %1, %cst {dimension_numbers = #tpu.dot_dimension_numbers<[1], [0], [0], [1], [0, 0, 1, 1], [], []>} : vector<32x37xf32>, vector<37x64xf32>, vector<32x64xf32> -> vector<32x64xf32>
    %c0_3 = arith.constant 0 : index
    %c0_4 = arith.constant 0 : index
    %3 = vector.load %arg3[%c0_3, %c0_4] : memref<1x64xf32, #tpu.memory_space<vmem>>, vector<1x64xf32>
    %4 = vector.broadcast %3 : vector<1x64xf32> to vector<32x64xf32>
    %5 = arith.addf %2, %4 : vector<32x64xf32>
    %cst_5 = arith.constant dense<0.000000e+00> : vector<32xf32>
    %6 = vector.multi_reduction <add>, %5, %cst_5 [1] : vector<32x64xf32> to vector<32xf32>
    %7 = vector.shape_cast %6 : vector<32xf32> to vector<32x1xf32>
    %cst_6 = arith.constant 6.400000e+01 : f32
    %8 = vector.broadcast %cst_6 : f32 to vector<32x1xf32>
    %9 = arith.divf %7, %8 : vector<32x1xf32>
    %10 = vector.broadcast %9 : vector<32x1xf32> to vector<32x64xf32>
    %11 = arith.subf %5, %10 : vector<32x64xf32>
    %12 = arith.mulf %11, %11 : vector<32x64xf32>
    %cst_7 = arith.constant dense<0.000000e+00> : vector<32xf32>
    %13 = vector.multi_reduction <add>, %12, %cst_7 [1] : vector<32x64xf32> to vector<32xf32>
    %14 = vector.shape_cast %13 : vector<32xf32> to vector<32x1xf32>
    %cst_8 = arith.constant 6.400000e+01 : f32
    %15 = vector.broadcast %cst_8 : f32 to vector<32x1xf32>
    %16 = arith.divf %14, %15 : vector<32x1xf32>
    %cst_9 = arith.constant 9.99999974E-6 : f32
    %17 = vector.broadcast %cst_9 : f32 to vector<32x1xf32>
    %18 = arith.addf %16, %17 : vector<32x1xf32>
    %19 = math.rsqrt %18 : vector<32x1xf32>
    %20 = vector.broadcast %19 : vector<32x1xf32> to vector<32x64xf32>
    %21 = arith.mulf %11, %20 : vector<32x64xf32>
    %c0_10 = arith.constant 0 : index
    %c0_11 = arith.constant 0 : index
    %22 = vector.load %arg4[%c0_10, %c0_11] : memref<1x64xf32, #tpu.memory_space<vmem>>, vector<1x64xf32>
    %23 = vector.broadcast %22 : vector<1x64xf32> to vector<32x64xf32>
    %24 = arith.mulf %21, %23 : vector<32x64xf32>
    %c0_12 = arith.constant 0 : index
    %c0_13 = arith.constant 0 : index
    %25 = vector.load %arg5[%c0_12, %c0_13] : memref<1x64xf32, #tpu.memory_space<vmem>>, vector<1x64xf32>
    %26 = vector.broadcast %25 : vector<1x64xf32> to vector<32x64xf32>
    %27 = arith.addf %24, %26 : vector<32x64xf32>
    %cst_14 = arith.constant 0.000000e+00 : f32
    %28 = vector.broadcast %cst_14 : f32 to vector<32x64xf32>
    %29 = arith.maximumf %27, %28 : vector<32x64xf32>
    %c0_15 = arith.constant 0 : index
    %c0_16 = arith.constant 0 : index
    %30 = vector.load %arg6[%c0_15, %c0_16] : memref<64x64xf32, #tpu.memory_space<vmem>>, vector<64x64xf32>
    %cst_17 = arith.constant dense<0.000000e+00> : vector<32x64xf32>
    %31 = tpu.matmul %29, %30, %cst_17 {dimension_numbers = #tpu.dot_dimension_numbers<[1], [0], [0], [1], [0, 0, 1, 1], [], []>} : vector<32x64xf32>, vector<64x64xf32>, vector<32x64xf32> -> vector<32x64xf32>
    %c0_18 = arith.constant 0 : index
    %c0_19 = arith.constant 0 : index
    %32 = vector.load %arg7[%c0_18, %c0_19] : memref<1x64xf32, #tpu.memory_space<vmem>>, vector<1x64xf32>
    %33 = vector.broadcast %32 : vector<1x64xf32> to vector<32x64xf32>
    %34 = arith.addf %31, %33 : vector<32x64xf32>
    %cst_20 = arith.constant 2.000000e+01 : f32
    %35 = vector.broadcast %cst_20 : f32 to vector<32x64xf32>
    %36 = arith.cmpf ogt, %34, %35 : vector<32x64xf32>
    %cst_21 = arith.constant 2.000000e+01 : f32
    %37 = vector.broadcast %cst_21 : f32 to vector<32x64xf32>
    %38 = arith.minimumf %34, %37 : vector<32x64xf32>
    %39 = math.exp %38 : vector<32x64xf32>
    %40 = math.log1p %39 : vector<32x64xf32>
    %41 = arith.select %36, %34, %40 : vector<32x64xi1>, vector<32x64xf32>
    %cst_22 = arith.constant 9.99989986 : f32
    %42 = vector.broadcast %cst_22 : f32 to vector<32x64xf32>
    %43 = arith.mulf %42, %41 : vector<32x64xf32>
    %cst_23 = arith.constant 9.99999974E-5 : f32
    %44 = vector.broadcast %cst_23 : f32 to vector<32x64xf32>
    %45 = arith.addf %44, %43 : vector<32x64xf32>
    %46 = tpu.iota {dimensions = array<i32: 1>} : vector<32x64xi32>
    %c32_i32 = arith.constant 32 : i32
    %47 = vector.broadcast %c32_i32 : i32 to vector<32x64xi32>
    %48 = arith.cmpi sge, %46, %47 : vector<32x64xi32>
    %49 = arith.select %48, %45, %34 : vector<32x64xi1>, vector<32x64xf32>
    %c0_24 = arith.constant 0 : index
    %c0_25 = arith.constant 0 : index
    %50 = vector.load %arg8[%c0_24, %c0_25] : memref<32x64xf32, #tpu.memory_space<vmem>>, vector<32x64xf32>
    tpu.vector_store %arg8[%c0_24, %c0_25], %49 {strides = array<i32>} : memref<32x64xf32, #tpu.memory_space<vmem>>, vector<32x64xf32>,
    return
  }
  func.func @transform_0(%arg0: i32) -> (i32, i32) {
    %c0_i32 = arith.constant 0 : i32
    %c0_i32_0 = arith.constant 0 : i32
    return %arg0, %c0_i32 : i32, i32
  }
  func.func @transform_1(%arg0: i32) -> (i32, i32) {
    %c0_i32 = arith.constant 0 : i32
    %c0_i32_0 = arith.constant 0 : i32
    %c0_i32_1 = arith.constant 0 : i32
    return %c0_i32, %c0_i32_0 : i32, i32
  }
  func.func @transform_2(%arg0: i32) -> (i32, i32) {
    %c0_i32 = arith.constant 0 : i32
    %c0_i32_0 = arith.constant 0 : i32
    %c0_i32_1 = arith.constant 0 : i32
    return %c0_i32, %c0_i32_0 : i32, i32
  }
  func.func @transform_3(%arg0: i32) -> (i32, i32) {
    %c0_i32 = arith.constant 0 : i32
    %c0_i32_0 = arith.constant 0 : i32
    %c0_i32_1 = arith.constant 0 : i32
    return %c0_i32, %c0_i32_0 : i32, i32
  }
  func.func @transform_4(%arg0: i32) -> (i32, i32) {
    %c0_i32 = arith.constant 0 : i32
    %c0_i32_0 = arith.constant 0 : i32
    %c0_i32_1 = arith.constant 0 : i32
    return %c0_i32, %c0_i32_0 : i32, i32
  }
  func.func @transform_5(%arg0: i32) -> (i32, i32) {
    %c0_i32 = arith.constant 0 : i32
    %c0_i32_0 = arith.constant 0 : i32
    %c0_i32_1 = arith.constant 0 : i32
    return %c0_i32, %c0_i32_0 : i32, i32
  }
  func.func @transform_6(%arg0: i32) -> (i32, i32) {
    %c0_i32 = arith.constant 0 : i32
    %c0_i32_0 = arith.constant 0 : i32
    %c0_i32_1 = arith.constant 0 : i32
    return %c0_i32, %c0_i32_0 : i32, i32
  }
  func.func @transform_7(%arg0: i32) -> (i32, i32) {
    %c0_i32 = arith.constant 0 : i32
    %c0_i32_0 = arith.constant 0 : i32
    return %arg0, %c0_i32 : i32, i32
  }
}

</mosaic_0001>

<bundles_post_ra>
// kernel: probabilistic_transition_forward.1
= control target key start
LH: loop header
LB: loop body
LE: loop exit
PB: predicated region body
PF: predicated region fallthrough
CT: control target
= control target key end

     0   :  { %s886_s24 = smov 0   ;;  %s1025_s0 = inlined_call_operand.vmem [shape: f32[128,37], index: 0, kind: input, shape index: {}]   ;;  %s1026_s1 = inlined_call_operand.vmem [shape: f32[37,64], index: 1, kind: input, shape index: {}]   ;;  %s1027_s2 = inlined_call_operand.vmem [shape: f32[1,64], index: 2, kind: input, shape index: {}]   ;;  %s1028_s3 = inlined_call_operand.vmem [shape: f32[1,64], index: 3, kind: input, shape index: {}]   ;;  %s1029_s4 = inlined_call_operand.vmem [shape: f32[1,64], index: 4, kind: input, shape index: {}]   ;;  %s1030_s5 = inlined_call_operand.vmem [shape: f32[64,64], index: 5, kind: input, shape index: {}]   ;;  %s1031_s6 = inlined_call_operand.vmem [shape: f32[1,64], index: 6, kind: input, shape index: {}]   ;;  %s1032_s7 = inlined_call_operand.vmem [shape: f32[128,64], index: 7, kind: output, shape index: {}]  }
   0x1 LB: > { %s723_s25 = sadd.s32 4294967295, %s844_s24   ;;  %p727_p0 = scmp.ge.s32.totalorder %s844_s24, 1  ;;  %s844_s24 = sphi %s886_s24, %s17_s24  }
   0x2   : > { %p238_p1 = scmp.lt.s32.totalorder %s844_s24, 5 }
   0x4   : > { %p239_p2 = pnand %p727_p0, %p238_p1 }
   0x5   : > { %s728_s30 = sshll.u32 (!%p239_p2), %s723_s25, 2 }
   0x6   : > { %242 = sbr.rel (%p239_p2) target bundleno = 778 (0x30a), region = 48  ;;  %p271_p3 = scmp.lt.s32.totalorder (!%p239_p2), %s728_s30, 15 }
   0xb   : > { %v290_v0 = vld [vmem:[%s1026_s1 + $0x20] sm:$0x1f]  ;;  %vm311_vm0 = vcmask 1044480   ;;  %v289_v1 = vld [vmem:[%s1026_s1 + $0x18] sm:$0xff]  ;;  %v288_v2 = vld [vmem:[%s1026_s1 + $0x10] sm:$0xff]  ;;  %s1034_s30 = smov (!%p271_p3, %s728_s30), 15 }
   0xc   : > { %768 = vmatprep.subr.msk.mxu0 %vm311_vm0, %v290_v0  ;;  %v287_v3 = vld [vmem:[%s1026_s1 + $0x8] sm:$0xff]  ;;  %s729_s12 = sshll.u32 %s1034_s30, 3  ;;  %vm298_vm1 = vcmask 302080   ;;  %v286_v4 = vld [vmem:[%s1026_s1] sm:$0xff]  ;;  %vm400_vm2 = vcmask 523264   ;;  %v487_v42 = vld [vmem:[%s1030_s5 + $0x38] sm:$0xff] }
   0xd   : > { %769 = vmatpush3.msk.msra.mxu0 %vm311_vm0, %v290_v0  ;;  %s274_s17 = scalar_lea.vmem %s1025_s0, %s729_s12  ;;  %v732_v10 = vld [vmem:[%s1027_s2] ss:$0 sm:$0xff]  ;;  %v486_v43 = vld [vmem:[%s1030_s5 + $0x30] sm:$0xff]  ;;  %784 = vmatprep.subr.mxu1 %v487_v42  ;;  %v485_v44 = vld [vmem:[%s1030_s5 + $0x28] sm:$0xff]  ;;  %s280_s25 = scalar_lea.vmem %s1032_s7, %s729_s12 }
   0xe   : > { %770 = vmatprep.subr.mxu0 %v289_v1  ;;  %v282_v5 = vld [vmem:[%s274_s17] sm:$0xff]  ;;  %v283_v6 = vld [vmem:[%s274_s17 + $0x8] sm:$0xff]  ;;  %v284_v7 = vld [vmem:[%s274_s17 + $0x10] sm:$0xff]  ;;  %785 = vmatpush3.msra.mxu1 %v487_v42 }
   0xf   : > { %771 = vmatpush3.msra.mxu0 %v289_v1  ;;  %778 = vmatprep.mubr.msk.f32.mxu0 %vm298_vm1, %v282_v5  ;;  %v285_v8 = vld [vmem:[%s274_s17 + $0x18] sm:$0xff]  ;;  %v484_v45 = vld [vmem:[%s1030_s5 + $0x20] sm:$0xff]  ;;  %v482_v47 = vld [vmem:[%s1030_s5 + $0x10] sm:$0xff] }
  0x10   : > { %772 = vmatprep.subr.mxu0 %v288_v2  ;;  %786 = vmatprep.subr.mxu1 %v486_v43  ;;  %v483_v46 = vld [vmem:[%s1030_s5 + $0x18] sm:$0xff]  ;;  %v481_v48 = vld [vmem:[%s1030_s5 + $0x8] sm:$0xff]  ;;  %v480_v49 = vld [vmem:[%s1030_s5] sm:$0xff] }
  0x11   : > { %773 = vmatpush3.msra.mxu0 %v288_v2  ;;  %787 = vmatpush3.msra.mxu1 %v486_v43  ;;  %v738_v63 = vld [vmem:[%s1028_s3] ss:$0 sm:$0xff] }
  0x12   : > { %774 = vmatprep.subr.mxu0 %v287_v3  ;;  %788 = vmatprep.subr.mxu1 %v485_v44  ;;  %v739_v1 = vld [vmem:[%s1029_s4] ss:$0 sm:$0xff] }
  0x13   : > { %775 = vmatpush3.msra.mxu0 %v287_v3  ;;  %789 = vmatpush3.msra.mxu1 %v485_v44 }
  0x14   : > { %776 = vmatprep.subr.mxu0 %v286_v4  ;;  %790 = vmatprep.subr.mxu1 %v484_v45 }
  0x15   : > { %777 = vmatpush3.msra.mxu0 %v286_v4  ;;  %791 = vmatpush3.msra.mxu1 %v484_v45 }
  0x16   : > { %779 = vmatmul.mubr.msk.f32.vlgmr.msra.gmra.mxu0 %vm298_vm1, %v283_v6  ;;  %792 = vmatprep.subr.mxu1 %v483_v46 }
  0x17   : > { %781 = vmatprep.mubr.msk.f32.mxu0 %vm298_vm1, %v284_v7  ;;  %793 = vmatpush3.msra.mxu1 %v483_v46 }
  0x18   : > { %794 = vmatprep.subr.mxu1 %v482_v47 }
  0x19   : > { %795 = vmatpush3.msra.mxu1 %v482_v47 }
  0x1a   : > { %782 = vmatmul.mubr.msk.f32.gmra.mxu0 %vm298_vm1, %v285_v8  ;;  %796 = vmatprep.subr.mxu1 %v481_v48 }
  0x1b   : > { %797 = vmatpush3.msra.mxu1 %v481_v48 }
  0x1c   : > { %798 = vmatprep.subr.mxu1 %v480_v49 }
  0x1d   : > { %799 = vmatpush3.msra.mxu1 %v480_v49 }
  0xd6   : > { %v780_v9 = vpop.f32.mrf.mxu0 }
  0xd7   : > { %v387_v14 = vadd.f32 %v780_v9, %v732_v10 }
  0xd8   : > { %v381_v11 = vpop.f32.mrf.mxu0 }
  0xd9   : > { %v382_v12 = vadd.f32 %v732_v10, %v381_v11  ;;  %v404_v20 = vsel %vm400_vm2, %v387_v14, 0.0 }
  0xda   : > { %v783_v13 = vpop.f32.mrf.mxu0 }
  0xdb   : > { %v401_v15 = vsel %vm400_vm2, %v382_v12, 0.0  ;;  %v397_v18 = vadd.f32 %v783_v13, %v732_v10 }
  0xdc   : > { %v391_v16 = vpop.f32.mrf.mxu0  ;;  %402 = vadd.xlane.f32.xlu0 %v401_v15 }
  0xdd   : > { %v392_v17 = vadd.f32 %v732_v10, %v391_v16  ;;  %v410_v21 = vsel %vm400_vm2, %v397_v18, 0.0 }
  0xdf   : > { %v407_v19 = vsel %vm400_vm2, %v392_v17, 0.0 }
  0xe0   : > { %408 = vadd.xlane.f32.xlu1 %v407_v19  ;;  %405 = vadd.xlane.f32.xlu0 %v404_v20  ;;  %v740_v20 = vld [vmem:[%s1031_s6] ss:$0 sm:$0xff] }
  0xe4   : > { %411 = vadd.xlane.f32.xlu1 %v410_v21 }
 0x165   : > { %v403_v22 = vpop.xlane.xlu0 %402 }
 0x166   : > { %v414_v23 = vmul.f32 0.015625, %v403_v22 }
 0x168   : > { %v924_v24 = vsub.f32 %v382_v12, %v414_v23 }
 0x169   : > { %v409_v25 = vpop.xlane.xlu1 %408  ;;  %v406_v26 = vpop.xlane.xlu0 %405 }
 0x16a   : > { %v416_v27 = vmul.f32 0.015625, %v409_v25  ;;  %v415_v28 = vmul.f32 0.015625, %v406_v26  ;;  %v422_v29 = vmul.f32 %v924_v24, %v924_v24 }
 0x16c   : > { %v928_v30 = vsub.f32 %v392_v17, %v416_v27  ;;  %v930_v31 = vsub.f32 %v387_v14, %v415_v28  ;;  %v426_v32 = vsel %vm400_vm2, %v422_v29, 0.0 }
 0x16d   : > { %v412_v33 = vpop.xlane.xlu1 %411  ;;  %427 = vadd.xlane.f32.xlu0 %v426_v32 }
 0x16e   : > { %v417_v34 = vmul.f32 0.015625, %v412_v33  ;;  %v424_v35 = vmul.f32 %v928_v30, %v928_v30  ;;  %v423_v36 = vmul.f32 %v930_v31, %v930_v31 }
 0x170   : > { %v937_v37 = vsub.f32 %v397_v18, %v417_v34  ;;  %v432_v38 = vsel %vm400_vm2, %v424_v35, 0.0  ;;  %v429_v39 = vsel %vm400_vm2, %v423_v36, 0.0 }
 0x171   : > { %433 = vadd.xlane.f32.xlu0 %v432_v38  ;;  %430 = vadd.xlane.f32.xlu1 %v429_v39 }
 0x172   : > { %v425_v40 = vmul.f32 %v937_v37, %v937_v37 }
 0x174   : > { %v435_v41 = vsel %vm400_vm2, %v425_v40, 0.0 }
 0x175   : > { %436 = vadd.xlane.f32.xlu1 %v435_v41 }
 0x1f6   : > { %v428_v50 = vpop.xlane.xlu0 %427 }
 0x1f7   : > { %v438_v51 = vmul.f32 0.015625, %v428_v50  ;;  %v656_v50 = vlaneseq }
 0x1f9   : > { %v442_v52 = vadd.f32 1e-05, %v438_v51 }
 0x1fa   : > { %v431_v53 = vpop.xlane.xlu1 %430  ;;  %v434_v54 = vpop.xlane.xlu0 %433 }
 0x1fb   : > { %814 = vrsqrt.f32 %v442_v52  ;;  %v439_v55 = vmul.f32 0.015625, %v431_v53  ;;  %v440_v56 = vmul.f32 0.015625, %v434_v54 }
 0x1fd   : > { %v443_v57 = vadd.f32 1e-05, %v439_v55  ;;  %v444_v58 = vadd.f32 1e-05, %v440_v56 }
 0x1fe   : > { %v437_v59 = vpop.xlane.xlu1 %436 }
 0x1ff   : > { %816 = vrsqrt.f32 %v443_v57  ;;  %v441_v60 = vmul.f32 0.015625, %v437_v59  ;;  %v657_v59 = vand.u32 127, %v656_v50 }
 0x200   : > { %818 = vrsqrt.f32 %v444_v58 }
 0x201   : > { %v445_v61 = vadd.f32 1e-05, %v441_v60  ;;  %vm658_vm7 = vcmp.ge.s32.totalorder %v657_v59, 32 }
 0x203   : > { %820 = vrsqrt.f32 %v445_v61 }
 0x208   : > { %v815_v62 = vpop.eup %814 }
 0x209   : > { %v450_v0 = vmul.f32 %v815_v62, %v924_v24 }
 0x20b   : > { %v461_v2 = vmul.f32 %v738_v63, %v450_v0 }
 0x20c   : > { %v817_v3 = vpop.eup %816 }
 0x20d   : > { %v819_v4 = vpop.eup %818  ;;  %v472_v5 = vadd.f32 %v739_v1, %v461_v2  ;;  %v451_v6 = vmul.f32 %v817_v3, %v930_v31 }
 0x20e   : > { %v452_v7 = vmul.f32 %v819_v4, %v928_v30 }
 0x20f   : > { %v476_v8 = vmax.f32 %v472_v5, 0.0  ;;  %v462_v9 = vmul.f32 %v738_v63, %v451_v6 }
 0x210   : > { %v821_v10 = vpop.eup %820  ;;  %v463_v11 = vmul.f32 %v738_v63, %v452_v7 }
 0x211   : > { %800 = vmatprep.mubr.msk.f32.mxu1 %vm400_vm2, %v476_v8  ;;  %v473_v12 = vadd.f32 %v739_v1, %v462_v9  ;;  %v453_v13 = vmul.f32 %v821_v10, %v937_v37 }
 0x212   : > { %v474_v14 = vadd.f32 %v739_v1, %v463_v11 }
 0x213   : > { %v477_v15 = vmax.f32 %v473_v12, 0.0  ;;  %v464_v16 = vmul.f32 %v738_v63, %v453_v13 }
 0x214   : > { %v478_v17 = vmax.f32 %v474_v14, 0.0 }
 0x215   : > { %801 = vmatmul.mubr.msk.f32.vlgmr.msra.gmra.mxu1 %vm400_vm2, %v477_v15  ;;  %v475_v18 = vadd.f32 %v739_v1, %v464_v16 }
 0x216   : > { %803 = vmatprep.mubr.msk.f32.mxu1 %vm400_vm2, %v478_v17 }
 0x217   : > { %v479_v19 = vmax.f32 %v475_v18, 0.0 }
 0x219   : > { %804 = vmatmul.mubr.msk.f32.gmra.mxu1 %vm400_vm2, %v479_v19 }
 0x2d5   : > { %v802_v21 = vpop.f32.mrf.mxu1 }
 0x2d6   : > { %v985_v22 = vadd.f32 %v802_v21, %v740_v20 }
 0x2d7   : > { %v573_v23 = vpop.f32.mrf.mxu1 }
 0x2d8   : > { %v597_v24 = vmin.f32 %v985_v22, 20.0  ;;  %v988_v25 = vadd.f32 %v740_v20, %v573_v23  ;;  %vm593_vm3 = vcmp.gt.f32.partialorder %v985_v22, 20.0 }
 0x2d9   : > { %v805_v26 = vpop.f32.mrf.mxu1 }
 0x2da   : > { %v602_v27 = vmul.f32 1.442695, %v597_v24  ;;  %v596_v28 = vmin.f32 %v988_v25, 20.0  ;;  %v991_v29 = vadd.f32 %v805_v26, %v740_v20  ;;  %vm592_vm5 = vcmp.gt.f32.partialorder %v988_v25, 20.0 }
 0x2db   : > { %v583_v30 = vpop.f32.mrf.mxu1 }
 0x2dc   : > { %822 = vpow2.f32 %v602_v27  ;;  %v600_v31 = vmul.f32 1.442695, %v596_v28  ;;  %v599_v32 = vmin.f32 %v991_v29, 20.0  ;;  %v994_v33 = vadd.f32 %v740_v20, %v583_v30 }
 0x2dd   : > { %vm595_vm9 = vcmp.gt.f32.partialorder %v991_v29, 20.0 }
 0x2de   : > { %824 = vpow2.f32 %v600_v31  ;;  %v606_v34 = vmul.f32 1.442695, %v599_v32  ;;  %v598_v35 = vmin.f32 %v994_v33, 20.0  ;;  %vm594_vm11 = vcmp.gt.f32.partialorder %v994_v33, 20.0 }
 0x2e0   : > { %826 = vpow2.f32 %v606_v34  ;;  %v604_v36 = vmul.f32 1.442695, %v598_v35 }
 0x2e2   : > { %828 = vpow2.f32 %v604_v36 }
 0x2e9   : > { %v823_v37 = vpop.eup %822 }
 0x2ea   : > { %v617_v38 = vadd.f32 1.0, %v823_v37  ;;  %v620_v45 = vmul.f32 -0.5, %v823_v37  ;;  %v623_v49 = vand.u32 2147483647, %v823_v37 }
 0x2eb   : > { %v825_v39 = vpop.eup %824 }
 0x2ec   : > { %830 = vlog2.f32 %v617_v38  ;;  %v608_v40 = vadd.f32 1.0, %v825_v39  ;;  %v611_v46 = vmul.f32 -0.5, %v825_v39  ;;  %v621_v48 = vadd.f32 1.0, %v620_v45 }
 0x2ed   : > { %v827_v41 = vpop.eup %826  ;;  %v614_v53 = vand.u32 2147483647, %v825_v39  ;;  %vm624_vm4 = vcmp.lt.f32.partialorder %v623_v49, 0.0004427343 }
 0x2ee   : > { %832 = vlog2.f32 %v608_v40  ;;  %v635_v42 = vadd.f32 1.0, %v827_v41  ;;  %v638_v47 = vmul.f32 -0.5, %v827_v41  ;;  %v612_v51 = vadd.f32 1.0, %v611_v46 }
 0x2ef   : > { %v829_v43 = vpop.eup %828  ;;  %v622_v57 = vmul.f32 %v823_v37, %v621_v48  ;;  %v641_v60 = vand.u32 2147483647, %v827_v41  ;;  %vm615_vm6 = vcmp.lt.f32.partialorder %v614_v53, 0.0004427343 }
 0x2f0   : > { %834 = vlog2.f32 %v635_v42  ;;  %v626_v44 = vadd.f32 1.0, %v829_v43  ;;  %v639_v54 = vadd.f32 1.0, %v638_v47  ;;  %v629_v55 = vmul.f32 -0.5, %v829_v43 }
 0x2f1   : > { %v613_v63 = vmul.f32 %v825_v39, %v612_v51  ;;  %v632_v7 = vand.u32 2147483647, %v829_v43  ;;  %vm642_vm8 = vcmp.lt.f32.partialorder %v641_v60, 0.0004427343 }
 0x2f2   : > { %836 = vlog2.f32 %v626_v44  ;;  %v640_v2 = vmul.f32 %v827_v41, %v639_v54  ;;  %v630_v3 = vadd.f32 1.0, %v629_v55 }
 0x2f3   : > { %vm633_vm10 = vcmp.lt.f32.partialorder %v632_v7, 0.0004427343 }
 0x2f4   : > { %v631_v15 = vmul.f32 %v829_v43, %v630_v3 }
 0x2f9   : > { %v831_v52 = vpop.eup %830 }
 0x2fa   : > { %v619_v56 = vmul.f32 0.6931472, %v831_v52 }
 0x2fb   : > { %v833_v58 = vpop.eup %832 }
 0x2fc   : > { %v625_v61 = vsel %vm624_vm4, %v622_v57, %v619_v56  ;;  %v610_v62 = vmul.f32 0.6931472, %v833_v58 }
 0x2fd   : > { %v835_v0 = vpop.eup %834  ;;  %v645_v1 = vsel %vm593_vm3, %v985_v22, %v625_v61 }
 0x2fe   : > { %v649_v4 = vmul.f32 9.9999, %v645_v1  ;;  %v616_v5 = vsel %vm615_vm6, %v613_v63, %v610_v62  ;;  %v637_v6 = vmul.f32 0.6931472, %v835_v0 }
 0x2ff   : > { %v644_v8 = vsel %vm592_vm5, %v988_v25, %v616_v5  ;;  %v837_v9 = vpop.eup %836 }
 0x300   : > { %v653_v10 = vadd.f32 0.0001, %v649_v4  ;;  %v648_v11 = vmul.f32 9.9999, %v644_v8  ;;  %v643_v12 = vsel %vm642_vm8, %v640_v2, %v637_v6  ;;  %v628_v14 = vmul.f32 0.6931472, %v837_v9 }
 0x301   : > { %v647_v13 = vsel %vm595_vm9, %v991_v29, %v643_v12 }
 0x302   : > { %v660_v16 = vsel %vm658_vm7, %v653_v10, %v985_v22  ;;  %v652_v17 = vadd.f32 0.0001, %v648_v11  ;;  %v651_v18 = vmul.f32 9.9999, %v647_v13  ;;  %v634_v19 = vsel %vm633_vm10, %v631_v15, %v628_v14 }
 0x303   : > { %664 = vst.msk [vmem:[%s280_s25 + $0x8] sm:$0xff] %vm400_vm2, %v660_v16  ;;  %v646_v23 = vsel %vm594_vm11, %v994_v33, %v634_v19 }
 0x304   : > { %v659_v20 = vsel %vm658_vm7, %v652_v17, %v988_v25  ;;  %v655_v21 = vadd.f32 0.0001, %v651_v18  ;;  %v650_v24 = vmul.f32 9.9999, %v646_v23 }
 0x305   : > { %663 = vst.msk [vmem:[%s280_s25] sm:$0xff] %vm400_vm2, %v659_v20 }
 0x306   : > { %v662_v22 = vsel %vm658_vm7, %v655_v21, %v991_v29  ;;  %v654_v26 = vadd.f32 0.0001, %v650_v24 }
 0x307   : > { %666 = vst.msk [vmem:[%s280_s25 + $0x18] sm:$0xff] %vm400_vm2, %v662_v22 }
 0x308   : > { %v661_v27 = vsel %vm658_vm7, %v654_v26, %v994_v33 }
 0x309   : > { %665 = vst.msk [vmem:[%s280_s25 + $0x10] sm:$0xff] %vm400_vm2, %v661_v27 }
 0x30a PF: > { %s17_s24 = sadd.s32 1, %s844_s24  }
 0x30b   : > { %p14_p4 = scmp.ge.s32.totalorder %s17_s24, 6  }
 0x30d   :  { %16 = sbr.rel (!%p14_p4) target bundleno = 1 (0x1), region = 78 }

</bundles_post_ra>
